<compile_context>
chip_gen: v5e
topology: v5e:2x2
jax: 0.10.0
libtpu: 0.0.40
codegen_flags: <defaults>
</compile_context>

<pallas_src>
import functools

import jax
import jax.numpy as jnp
from jax import lax
from jax.experimental import pallas as pl
from jax.experimental.pallas import tpu as pltpu


def _reproj_kernel(params_ref, depth_ref, out_ref, *, row_tile, eps, offset):
    # params_ref : SMEM (1, 3, 4)  -- folded [A | b] per batch
    # depth_ref  : VMEM (1, TH, W) -- depth tile
    # out_ref    : VMEM (1, 2, TH, W) -- x / y planes
    d = depth_ref[0]                                        # (TH, W)

    row0 = pl.program_id(1) * row_tile
    u = lax.broadcasted_iota(jnp.int32, d.shape, 1).astype(jnp.float32)
    v = (lax.broadcasted_iota(jnp.int32, d.shape, 0) + row0).astype(jnp.float32)

    p = lambda i, j: params_ref[0, i, j]                    # scalar from SMEM

    # q_i = d * (A[i,0]*u + A[i,1]*v + A[i,2]) + b_i
    q0 = d * (p(0, 0) * u + p(0, 1) * v + p(0, 2)) + p(0, 3)
    q1 = d * (p(1, 0) * u + p(1, 1) * v + p(1, 2)) + p(1, 3)
    q2 = d * (p(2, 0) * u + p(2, 1) * v + p(2, 2)) + p(2, 3)

    inv_den = 1.0 / (q2 + eps)                              # exact divide (tolerance)
    out_ref[0, 0, :, :] = q0 * inv_den - offset
    out_ref[0, 1, :, :] = q1 * inv_den - offset


def reprojection(depth, T, K, inv_K, *, height, width, normalized=True,
                 eps=1e-7):
    """Pallas equivalent of Reprojection.forward.

    Args:
      depth : (N,1,H,W) f32
      T, K, inv_K : (N,4,4) f32
    Returns:
      xy : (N,H,W,2) f32
    """
    f32 = jnp.float32
    N = depth.shape[0]
    depth_img = depth.reshape(N, height, width).astype(f32)

    # ---- fold the matrix chain (plain JAX, N tiny matmuls) -------------------
    Kf, Tf, iKf = K.astype(f32), T.astype(f32), inv_K.astype(f32)
    M = jnp.einsum("nij,njk->nik", Kf[:, :3, :], Tf)             # (N,3,4)
    A = jnp.einsum("nij,njk->nik", M[:, :, :3], iKf[:, :3, :3])  # (N,3,3)
    b = M[:, :, 3:4]                                             # (N,3,1)
    if normalized:
        scale = jnp.array([2.0 / (width - 1), 2.0 / (height - 1), 1.0], f32)
        A = A * scale[None, :, None]
        b = b * scale[None, :, None]
    params = jnp.concatenate([A, b], axis=-1)                    # (N,3,4)
    offset = 1.0 if normalized else 0.0

    # ---- row tiling over the image -------------------------------------------
    if height <= 128:
        row_tile, h_pad = height, height
    else:
        row_tile = 128
        h_pad = pl.cdiv(height, row_tile) * row_tile
        if h_pad != height:
            depth_img = jnp.pad(depth_img,
                                ((0, 0), (0, h_pad - height), (0, 0)),
                                constant_values=1.0)

    grid = (N, h_pad // row_tile)
    kernel = functools.partial(_reproj_kernel, row_tile=row_tile, eps=eps,
                               offset=offset)

    out = pl.pallas_call(
        kernel,
        out_shape=jax.ShapeDtypeStruct((N, 2, h_pad, width), f32),
        grid=grid,
        in_specs=[
            pl.BlockSpec((1, 3, 4), lambda n, i: (n, 0, 0),
                         memory_space=pltpu.SMEM),               # folded params
            pl.BlockSpec((1, row_tile, width), lambda n, i: (n, i, 0)),  # depth
        ],
        out_specs=pl.BlockSpec((1, 2, row_tile, width),
                               lambda n, i: (n, 0, i, 0)),
        compiler_params=pltpu.CompilerParams(
            dimension_semantics=("parallel", "parallel")),
    )(params, depth_img)

    out = out[:, :, :height, :]
    # Channels-last layout required by the PyTorch module.  Consumers that can
    # accept (N,2,H,W) should use `out` directly and skip this XLA relayout.
    return out.transpose(0, 2, 3, 1)


def _reference(depth, T, K, inv_K, *, height, width, normalized=True,
               eps=1e-7):
    """Pure-JAX mirror of the PyTorch module (unfused) for correctness."""
    N = depth.shape[0]
    HW = height * width
    xx, yy = jnp.meshgrid(jnp.arange(width, dtype=jnp.float32),
                          jnp.arange(height, dtype=jnp.float32), indexing="xy")
    xy1 = jnp.stack([xx.reshape(-1), yy.reshape(-1), jnp.ones(HW)], 0)[None]
    xy1 = jnp.broadcast_to(xy1, (N, 3, HW))
    points = jnp.einsum("nij,njk->nik", inv_K[:, :3, :3], xy1)
    points = depth.reshape(N, 1, HW) * points
    points = jnp.concatenate([points, jnp.ones((N, 1, HW))], axis=1)
    pt = jnp.einsum("nij,njk->nik", T, points)
    p2 = jnp.einsum("nij,njk->nik", K[:, :3, :], pt)
    xy = p2[:, :2, :] / (p2[:, 2:3, :] + eps)
    xy = xy.reshape(N, 2, height, width).transpose(0, 2, 3, 1)
    if normalized:
        x = xy[..., 0] / (width - 1)
        y = xy[..., 1] / (height - 1)
        xy = (jnp.stack([x, y], axis=-1) - 0.5) * 2.0
    return xy


if __name__ == "__main__":
    N, H, W = 2, 16, 16
    key = jax.random.PRNGKey(0)
    k_depth, k_t = jax.random.split(key)

    # depth map in (0.5, 5.0)
    depth = jax.random.uniform(k_depth, (N, 1, H, W), dtype=jnp.float32,
                               minval=0.5, maxval=5.0)

    # deterministic camera intrinsics (shared across batch) and its inverse
    fx, fy, cx, cy = 10.0, 12.0, W / 2.0, H / 2.0
    K1 = jnp.array([[fx, 0.0, cx, 0.0],
                    [0.0, fy, cy, 0.0],
                    [0.0, 0.0, 1.0, 0.0],
                    [0.0, 0.0, 0.0, 1.0]], dtype=jnp.float32)
    K = jnp.broadcast_to(K1, (N, 4, 4))
    inv_K = jnp.broadcast_to(jnp.linalg.inv(K1), (N, 4, 4))

    # transformation: identity plus small deterministic perturbation
    T = (jnp.broadcast_to(jnp.eye(4, dtype=jnp.float32), (N, 4, 4))
         + 0.05 * jax.random.normal(k_t, (N, 4, 4), dtype=jnp.float32))

    xy = reprojection(depth, T, K, inv_K, height=H, width=W, normalized=True)
    xy = jax.block_until_ready(xy)

    ref = _reference(depth, T, K, inv_K, height=H, width=W, normalized=True)
    assert xy.shape == (N, H, W, 2), xy.shape
    assert jnp.allclose(xy, ref, atol=1e-4, rtol=1e-4), \
        float(jnp.max(jnp.abs(xy - ref)))

    # also exercise the unnormalized path
    xy_u = jax.block_until_ready(
        reprojection(depth, T, K, inv_K, height=H, width=W, normalized=False))
    ref_u = _reference(depth, T, K, inv_K, height=H, width=W, normalized=False)
    assert jnp.allclose(xy_u, ref_u, atol=1e-3, rtol=1e-4), \
        float(jnp.max(jnp.abs(xy_u - ref_u)))

    print("KERNEL_OK")
</pallas_src>

<mosaic_0001>
module attributes {stable_mosaic.version = 11 : i64} {
  func.func @_reproj_kernel(%arg0: i32, %arg1: i32, %arg2: memref<1x3x4xf32, #tpu.memory_space<smem>>, %arg3: memref<1x16x16xf32, #tpu.memory_space<vmem>>, %arg4: memref<1x2x16x16xf32, #tpu.memory_space<vmem>>) attributes {dimension_semantics = [#tpu.dimension_semantics<parallel>, #tpu.dimension_semantics<parallel>], iteration_bounds = array<i64: 2, 1>, scalar_prefetch = 0 : i64, scratch_operands = 0 : i64, tpu.core_type = #tpu.core_type<tc>, window_params = [{transform_indices = @transform_0, window_bounds = array<i64: 1, 3, 4>}, {transform_indices = @transform_1, window_bounds = array<i64: 1, 16, 16>}, {transform_indices = @transform_2, window_bounds = array<i64: 1, 2, 16, 16>}]} {
    %c0 = arith.constant 0 : index
    %c0_0 = arith.constant 0 : index
    %c0_1 = arith.constant 0 : index
    %0 = vector.load %arg3[%c0, %c0_0, %c0_1] : memref<1x16x16xf32, #tpu.memory_space<vmem>>, vector<1x16x16xf32>
    %1 = vector.shape_cast %0 : vector<1x16x16xf32> to vector<16x16xf32>
    %c16_i32 = arith.constant 16 : i32
    %2 = arith.muli %arg1, %c16_i32 : i32
    %3 = tpu.iota {dimensions = array<i32: 1>} : vector<16x16xi32>
    %4 = arith.sitofp %3 : vector<16x16xi32> to vector<16x16xf32>
    %5 = tpu.iota {dimensions = array<i32: 0>} : vector<16x16xi32>
    %6 = vector.broadcast %2 : i32 to vector<16x16xi32>
    %7 = arith.addi %5, %6 : vector<16x16xi32>
    %8 = arith.sitofp %7 : vector<16x16xi32> to vector<16x16xf32>
    %c0_2 = arith.constant 0 : index
    %c0_3 = arith.constant 0 : index
    %c0_4 = arith.constant 0 : index
    %9 = memref.load %arg2[%c0_2, %c0_3, %c0_4] : memref<1x3x4xf32, #tpu.memory_space<smem>>
    %10 = vector.broadcast %9 : f32 to vector<16x16xf32>
    %11 = arith.mulf %10, %4 : vector<16x16xf32>
    %c0_5 = arith.constant 0 : index
    %c0_6 = arith.constant 0 : index
    %c1 = arith.constant 1 : index
    %12 = memref.load %arg2[%c0_5, %c0_6, %c1] : memref<1x3x4xf32, #tpu.memory_space<smem>>
    %13 = vector.broadcast %12 : f32 to vector<16x16xf32>
    %14 = arith.mulf %13, %8 : vector<16x16xf32>
    %15 = arith.addf %11, %14 : vector<16x16xf32>
    %c0_7 = arith.constant 0 : index
    %c0_8 = arith.constant 0 : index
    %c2 = arith.constant 2 : index
    %16 = memref.load %arg2[%c0_7, %c0_8, %c2] : memref<1x3x4xf32, #tpu.memory_space<smem>>
    %17 = vector.broadcast %16 : f32 to vector<16x16xf32>
    %18 = arith.addf %15, %17 : vector<16x16xf32>
    %19 = arith.mulf %1, %18 : vector<16x16xf32>
    %c0_9 = arith.constant 0 : index
    %c0_10 = arith.constant 0 : index
    %c3 = arith.constant 3 : index
    %20 = memref.load %arg2[%c0_9, %c0_10, %c3] : memref<1x3x4xf32, #tpu.memory_space<smem>>
    %21 = vector.broadcast %20 : f32 to vector<16x16xf32>
    %22 = arith.addf %19, %21 : vector<16x16xf32>
    %c0_11 = arith.constant 0 : index
    %c1_12 = arith.constant 1 : index
    %c0_13 = arith.constant 0 : index
    %23 = memref.load %arg2[%c0_11, %c1_12, %c0_13] : memref<1x3x4xf32, #tpu.memory_space<smem>>
    %24 = vector.broadcast %23 : f32 to vector<16x16xf32>
    %25 = arith.mulf %24, %4 : vector<16x16xf32>
    %c0_14 = arith.constant 0 : index
    %c1_15 = arith.constant 1 : index
    %c1_16 = arith.constant 1 : index
    %26 = memref.load %arg2[%c0_14, %c1_15, %c1_16] : memref<1x3x4xf32, #tpu.memory_space<smem>>
    %27 = vector.broadcast %26 : f32 to vector<16x16xf32>
    %28 = arith.mulf %27, %8 : vector<16x16xf32>
    %29 = arith.addf %25, %28 : vector<16x16xf32>
    %c0_17 = arith.constant 0 : index
    %c1_18 = arith.constant 1 : index
    %c2_19 = arith.constant 2 : index
    %30 = memref.load %arg2[%c0_17, %c1_18, %c2_19] : memref<1x3x4xf32, #tpu.memory_space<smem>>
    %31 = vector.broadcast %30 : f32 to vector<16x16xf32>
    %32 = arith.addf %29, %31 : vector<16x16xf32>
    %33 = arith.mulf %1, %32 : vector<16x16xf32>
    %c0_20 = arith.constant 0 : index
    %c1_21 = arith.constant 1 : index
    %c3_22 = arith.constant 3 : index
    %34 = memref.load %arg2[%c0_20, %c1_21, %c3_22] : memref<1x3x4xf32, #tpu.memory_space<smem>>
    %35 = vector.broadcast %34 : f32 to vector<16x16xf32>
    %36 = arith.addf %33, %35 : vector<16x16xf32>
    %c0_23 = arith.constant 0 : index
    %c2_24 = arith.constant 2 : index
    %c0_25 = arith.constant 0 : index
    %37 = memref.load %arg2[%c0_23, %c2_24, %c0_25] : memref<1x3x4xf32, #tpu.memory_space<smem>>
    %38 = vector.broadcast %37 : f32 to vector<16x16xf32>
    %39 = arith.mulf %38, %4 : vector<16x16xf32>
    %c0_26 = arith.constant 0 : index
    %c2_27 = arith.constant 2 : index
    %c1_28 = arith.constant 1 : index
    %40 = memref.load %arg2[%c0_26, %c2_27, %c1_28] : memref<1x3x4xf32, #tpu.memory_space<smem>>
    %41 = vector.broadcast %40 : f32 to vector<16x16xf32>
    %42 = arith.mulf %41, %8 : vector<16x16xf32>
    %43 = arith.addf %39, %42 : vector<16x16xf32>
    %c0_29 = arith.constant 0 : index
    %c2_30 = arith.constant 2 : index
    %c2_31 = arith.constant 2 : index
    %44 = memref.load %arg2[%c0_29, %c2_30, %c2_31] : memref<1x3x4xf32, #tpu.memory_space<smem>>
    %45 = vector.broadcast %44 : f32 to vector<16x16xf32>
    %46 = arith.addf %43, %45 : vector<16x16xf32>
    %47 = arith.mulf %1, %46 : vector<16x16xf32>
    %c0_32 = arith.constant 0 : index
    %c2_33 = arith.constant 2 : index
    %c3_34 = arith.constant 3 : index
    %48 = memref.load %arg2[%c0_32, %c2_33, %c3_34] : memref<1x3x4xf32, #tpu.memory_space<smem>>
    %49 = vector.broadcast %48 : f32 to vector<16x16xf32>
    %50 = arith.addf %47, %49 : vector<16x16xf32>
    %cst = arith.constant 1.000000e-07 : f32
    %51 = vector.broadcast %cst : f32 to vector<16x16xf32>
    %52 = arith.addf %50, %51 : vector<16x16xf32>
    %cst_35 = arith.constant 1.000000e+00 : f32
    %53 = vector.broadcast %cst_35 : f32 to vector<16x16xf32>
    %54 = arith.divf %53, %52 : vector<16x16xf32>
    %55 = arith.mulf %22, %54 : vector<16x16xf32>
    %cst_36 = arith.constant 1.000000e+00 : f32
    %56 = vector.broadcast %cst_36 : f32 to vector<16x16xf32>
    %57 = arith.subf %55, %56 : vector<16x16xf32>
    %c0_37 = arith.constant 0 : index
    %c0_38 = arith.constant 0 : index
    %c0_39 = arith.constant 0 : index
    %c0_40 = arith.constant 0 : index
    %58 = vector.load %arg4[%c0_37, %c0_38, %c0_39, %c0_40] : memref<1x2x16x16xf32, #tpu.memory_space<vmem>>, vector<1x1x16x16xf32>
    %59 = vector.shape_cast %58 : vector<1x1x16x16xf32> to vector<16x16xf32>
    %60 = vector.shape_cast %57 : vector<16x16xf32> to vector<1x1x16x16xf32>
    tpu.vector_store %arg4[%c0_37, %c0_38, %c0_39, %c0_40], %60 {strides = array<i32>} : memref<1x2x16x16xf32, #tpu.memory_space<vmem>>, vector<1x1x16x16xf32>,
    %61 = arith.mulf %36, %54 : vector<16x16xf32>
    %cst_41 = arith.constant 1.000000e+00 : f32
    %62 = vector.broadcast %cst_41 : f32 to vector<16x16xf32>
    %63 = arith.subf %61, %62 : vector<16x16xf32>
    %c0_42 = arith.constant 0 : index
    %c1_43 = arith.constant 1 : index
    %c0_44 = arith.constant 0 : index
    %c0_45 = arith.constant 0 : index
    %64 = vector.load %arg4[%c0_42, %c1_43, %c0_44, %c0_45] : memref<1x2x16x16xf32, #tpu.memory_space<vmem>>, vector<1x1x16x16xf32>
    %65 = vector.shape_cast %64 : vector<1x1x16x16xf32> to vector<16x16xf32>
    %66 = vector.shape_cast %63 : vector<16x16xf32> to vector<1x1x16x16xf32>
    tpu.vector_store %arg4[%c0_42, %c1_43, %c0_44, %c0_45], %66 {strides = array<i32>} : memref<1x2x16x16xf32, #tpu.memory_space<vmem>>, vector<1x1x16x16xf32>,
    return
  }
  func.func @transform_0(%arg0: i32, %arg1: i32) -> (i32, i32, i32) {
    %c0_i32 = arith.constant 0 : i32
    %c0_i32_0 = arith.constant 0 : i32
    %c0_i32_1 = arith.constant 0 : i32
    return %arg0, %c0_i32, %c0_i32_0 : i32, i32, i32
  }
  func.func @transform_1(%arg0: i32, %arg1: i32) -> (i32, i32, i32) {
    %c0_i32 = arith.constant 0 : i32
    %c0_i32_0 = arith.constant 0 : i32
    return %arg0, %arg1, %c0_i32 : i32, i32, i32
  }
  func.func @transform_2(%arg0: i32, %arg1: i32) -> (i32, i32, i32, i32) {
    %c0_i32 = arith.constant 0 : i32
    %c0_i32_0 = arith.constant 0 : i32
    %c0_i32_1 = arith.constant 0 : i32
    return %arg0, %c0_i32, %arg1, %c0_i32_0 : i32, i32, i32, i32
  }
}

</mosaic_0001>

<bundles_post_ra>
// kernel: tpu_custom_call.1
= control target key start
LH: loop header
LB: loop body
LE: loop exit
PB: predicated region body
PF: predicated region fallthrough
CT: control target
= control target key end

     0   :  { %7 = vsyncpa [#allocation5], 0  ;;  %s932_s0 = inlined_call_operand.vmem [shape: f32[2,3,4], index: 0, kind: input, shape index: {}]   ;;  %s933_s1 = inlined_call_operand.hbm [shape: f32[2,16,16], index: 1, kind: input, shape index: {}]   ;;  %s934_s2 = inlined_call_operand.hbm [shape: f32[2,2,16,16], index: 2, kind: output, shape index: {}]  }
   0x1   :  { %9 = vsyncpa [#allocation5 + $0x1], 0 }
   0x2   :  { %10 = vsyncpa [#allocation3], 0 }
   0x3   :  { %12 = vsyncpa [#allocation3 + $0x1], 0 }
   0x4   :  { %13 = vsyncpa [#allocation4], 0 }
   0x5   :  { %15 = vsyncpa [#allocation4 + $0x1], 0  ;;  %s741_s9 = smov 0   ;;  %s743_s10 = smov 0  }
   0x6   :  { %s745_s11 = smov 0   ;;  %s747_s12 = smov 0  }
   0x7   :  { %s749_s13 = smov 0   ;;  %s751_s14 = smov 0  }
   0x8 LB: > { %s467_s15 = sadd.s32 4294967295, %s710_s14   ;;  %s468_s16 = sadd.s32 4294967294, %s710_s14   ;;  %s710_s14 = sphi %s751_s14, %s21_s14   ;;  %s706_s13 = sphi %s749_s13, %s944_s13   ;;  %s702_s12 = sphi %s747_s12, %s943_s12   ;;  %s698_s11 = sphi %s745_s11, %s942_s11   ;;  %s694_s10 = sphi %s743_s10, %s941_s10   ;;  %s690_s9 = sphi %s741_s9, %s940_s9  }
   0x9   : > { %s33_s17 = sadd.s32 1, %s706_s13  ;;  %s40_s18 = sadd.s32 1, %s698_s11 }
   0xa   : > { %p35_p0 = scmp.ge.s32.totalorder %s33_s17, 2  ;;  %p47_p1 = scmp.ne.s32.totalorder %s698_s11, %s694_s10 }
   0xb   : > { %p48_p2 = scmp.eq.s32.totalorder %s710_s14, 0  ;;  %p53_p3 = scmp.ne.s32.totalorder %s694_s10, %s690_s9 }
   0xc   : > { %s946_s17 = smov (%p35_p0, %s33_s17), 0  ;;  %p54_p5 = scmp.eq.s32.totalorder %s467_s15, 0 }
   0xd   : > { %p782_p4 = por %p48_p2, %p47_p1  ;;  %s37_s20 = ssub.s32 %s706_s13, %s946_s17 }
   0xe   : > { %p107_p6 = scmp.eq.s32.totalorder %s467_s15, 1  ;;  %p38_p7 = scmp.eq.s32.totalorder %s37_s20, 0 }
   0xf   : > { %p788_p8 = por %p54_p5, %p53_p3  ;;  %p113_p10 = scmp.eq.s32.totalorder %s468_s16, 1 }
  0x10   : > { %p792_p9 = por %p107_p6, %p47_p1  ;;  %p470_p12 = scmp.ge.s32.totalorder %s710_s14, 2 }
  0x11   : > { %s797_s23 = scalar_select %p38_p7, %s698_s11, %s40_s18  }
  0x12   : > { %p799_p11 = por %p113_p10, %p53_p3  ;;  %p511_p13 = scmp.lt.s32.totalorder %s710_s14, 2 }
  0x13   : > { %s806_s25 = sand.u32 1, %s698_s11   ;;  %s472_s27 = sshll.u32 %s706_s13, 2 }
  0x14   : > { %s471_s26 = sshll.u32 %s806_s25, 9  ;;  %s141_s30 = scalar_lea.vmem %s932_s0, %s472_s27 }
  0x15   : > { %p815_p0 = pnand %p511_p13, %p782_p4  ;;  %s143_s4 = sshll.u32 %s141_s30, 4  ;;  %s144_s4 = int_to_ptr.vmem [resolvable:$true] %s143_s4 }
  0x16   : > { %p476_p1 = scmp.ge.s32.totalorder %s710_s14, 1  ;;  %s137_s5 = scalar_lea.smem [#allocation2], %s471_s26 }
  0x17   : > { %s134_s6 = scalar_lea.sflag [#allocation5], %s806_s25  ;;  %p172_p2 = scmp.lt.s32.totalorder %s710_s14, 3 }
  0x18   : > { %503 = dma.vmem_to_smem (!%p815_p0), %s144_s4, 64, %s137_s5, %s134_s6  }
  0x19   : > { %s473_s7 = sshll.u32 %s806_s25, 4  ;;  %s492_s8 = sshll.u32 %s706_s13, 4 }
  0x1a   : > { %p173_p3 = pnand %p476_p1, %p172_p2  ;;  %s161_s18 = scalar_lea.hbm %s933_s1, %s492_s8 }
  0x1b   : > { %s154_s19 = scalar_lea.vmem [#allocation6], %s473_s7  ;;  %s162_s27 = sshll.u32 %s161_s18, 4  ;;  %s163_s27 = int_to_ptr.hbm [resolvable:$true] %s162_s27 }
  0x1c   : > { %s164_s20 = sshll.u32 %s154_s19, 4  ;;  %s151_s28 = scalar_lea.sflag [#allocation3], %s806_s25  ;;  %s165_s20 = int_to_ptr.vmem [resolvable:$true] %s164_s20 }
  0x1d   : > { %s712_s29 = smov 128   ;;  %s713_s26 = smov 8  }
  0x1e   : > { %506 = dma.hbm_to_vmem [thread:$0]  (!%p815_p0), %s163_s27, 256, %s165_s20, %s151_s28, %s712_s29, %s712_s29, %s713_s26  }
  0x1f   : > { %176 = sbr.rel (%p173_p3) target bundleno = 91 (0x5b), region = 28  ;;  %s833_s30 = sand.u32 (!%p173_p3), 1, %s694_s10  }
  0x20   : > { %s477_s4 = sshll.u32 (!%p173_p3), %s833_s30, 9  ;;  %s179_s5 = scalar_lea.sflag (!%p173_p3), [#allocation5], %s833_s30 }
  0x21   : > { %s837_s6 = scalar_lea.smem (!%p173_p3), [#allocation2], %s477_s4 }
  0x24   : > { %677 = dma.done.wait (%p788_p8), %s179_s5, 64  }
  0x25   : > { %679 = vsyncadd (%p788_p8), %s179_s5, 4294967232  ;;  %s478_s25 = sshll.u32 %s833_s30, 4  ;;  %s189_s3 = scalar_lea.sflag [#allocation3], %s833_s30 }
  0x26   : > { %s845_s7 = scalar_lea.vmem [#allocation6], %s478_s25 }
  0x27   : > { %681 = dma.done.wait (%p788_p8), %s189_s3, 256  }
  0x28   : > { %683 = vsyncadd (%p788_p8), %s189_s3, 4294967040 }
  0x29   : > { %198 = sfence }
  0x2a   : > { %v225_v0 = vlaneseq  ;;  %s851_s8 = sld [smem:[#allocation2 + %s477_s4]]  ;;  %s714_s15 = smov 256   ;;  %v222_v15 = vld [vmem:[%s845_s7] sm:$0xff]  ;;  %v223_v19 = vld [vmem:[%s845_s7 + $0x8] sm:$0xff]  ;;  %vm329_vm8 = vcmask 130048  }
  0x2b   : > { %s274_s16 = sld [smem:[%s837_s6 + %s714_s15]]  ;;  %s715_s18 = smov 257  }
  0x2c   : > { %v229_v1 = vshrl.u32 %v225_v0, 7  ;;  %v226_v2 = vand.u32 127, %v225_v0  ;;  %s277_s19 = sld [smem:[%s837_s6 + %s715_s18]]  ;;  %s716_s21 = smov 258  }
  0x2d   : > { %s283_s20 = sld [smem:[%s837_s6 + %s716_s21]]  ;;  %s717_s27 = smov 1  }
  0x2e   : > { %v230_v3 = vadd.s32 8, %v229_v1  ;;  %v227_v4 = vcvt.s32.f32 %v226_v2  ;;  %s857_s28 = sld [smem:[%s837_s6 + %s717_s27]]  ;;  %v234_v5 = vcvt.s32.f32 %v229_v1  ;;  %s718_s29 = smov 259  }
  0x2f   : > { %s860_s26 = sld [smem:[%s837_s6 + %s718_s29]]  ;;  %s719_s4 = smov 128  }
  0x30   : > { %v235_v6 = vcvt.s32.f32 %v230_v3  ;;  %s864_s5 = sld [smem:[%s837_s6 + %s719_s4]]  ;;  %s720_s25 = smov 129   ;;  %v237_v13 = vstv %s851_s8 }
  0x31   : > { %v275_v7 = vstv %s274_s16  ;;  %s867_s3 = sld [smem:[%s837_s6 + %s720_s25]]  ;;  %s721_s15 = smov 2   ;;  %v238_v20 = vmul.f32 %v237_v13, %v227_v4 }
  0x32   : > { %v276_v8 = vmul.f32 %v275_v7, %v227_v4  ;;  %v278_v9 = vstv %s277_s19  ;;  %s873_s18 = sld [smem:[%s837_s6 + %s721_s15]]  ;;  %s722_s8 = smov 130  }
  0x33   : > { %v279_v10 = vmul.f32 %v278_v9, %v234_v5  ;;  %v284_v11 = vstv %s283_s20  ;;  %v280_v12 = vmul.f32 %v278_v9, %v235_v6  ;;  %s264_s16 = sld [smem:[%s837_s6 + %s722_s8]]  ;;  %s723_s7 = smov 3  }
  0x34   : > { %v240_v16 = vstv %s857_s28  ;;  %s881_s19 = sld [smem:[%s837_s6 + %s723_s7]]  ;;  %s724_s21 = smov 131  }
  0x35   : > { %v281_v14 = vadd.f32 %v279_v10, %v276_v8  ;;  %v282_v17 = vadd.f32 %v280_v12, %v276_v8  ;;  %v290_v21 = vstv %s860_s26  ;;  %v241_v23 = vmul.f32 %v240_v16, %v234_v5  ;;  %s885_s20 = sld [smem:[%s837_s6 + %s724_s21]]  ;;  %s479_s6 = sshll.u32 %s833_s30, 5 }
  0x36   : > { %v256_v25 = vstv %s864_s5  ;;  %v242_v27 = vmul.f32 %v240_v16, %v235_v6  ;;  %s493_s27 = sshll.u32 %s702_s12, 5  ;;  %s219_s5 = scalar_lea.vmem [#allocation7], %s479_s6 }
  0x37   : > { %v285_v18 = vadd.f32 %v284_v11, %v281_v14  ;;  %v286_v22 = vadd.f32 %v284_v11, %v282_v17  ;;  %v259_v26 = vstv %s867_s3  ;;  %v257_v31 = vmul.f32 %v256_v25, %v227_v4  ;;  %s353_s26 = scalar_lea.hbm %s934_s2, %s493_s27  ;;  %s354_s25 = sshll.u32 %s219_s5, 4  ;;  %s355_s25 = int_to_ptr.vmem [resolvable:$true] %s354_s25 }
  0x38   : > { %v260_v32 = vmul.f32 %v259_v26, %v234_v5  ;;  %v243_v33 = vadd.f32 %v241_v23, %v238_v20  ;;  %v261_v35 = vmul.f32 %v259_v26, %v235_v6  ;;  %v246_v36 = vstv %s873_s18  ;;  %s356_s12 = sshll.u32 %s353_s26, 4  ;;  %s340_s3 = scalar_lea.sflag [#allocation4], %s833_s30  ;;  %s357_s12 = int_to_ptr.hbm [resolvable:$true] %s356_s12 }
  0x39   : > { %v287_v24 = vmul.f32 %v285_v18, %v222_v15  ;;  %v288_v28 = vmul.f32 %v286_v22, %v223_v19  ;;  %v244_v37 = vadd.f32 %v242_v27, %v238_v20  ;;  %v265_v41 = vstv %s264_s16  ;;  %s638_s15 = sshra.s32 %s357_s12, 4  ;;  %s644_s7 = scalar_lea.hbm %s934_s2, 64  ;;  %s639_s15 = int_to_ptr.hbm [resolvable:$true] %s638_s15 }
  0x3a   : > { %v262_v39 = vadd.f32 %v260_v32, %v257_v31  ;;  %v247_v40 = vadd.f32 %v246_v36, %v243_v33  ;;  %v263_v42 = vadd.f32 %v261_v35, %v257_v31  ;;  %v252_v47 = vstv %s881_s19  ;;  %s640_s18 = scalar_lea.hbm %s639_s15, 32  ;;  %p645_p7 = scmp.lt.s32.totalorder %s639_s15, %s934_s2 }
  0x3b   : > { %v291_v29 = vadd.f32 %v290_v21, %v287_v24  ;;  %v292_v30 = vadd.f32 %v290_v21, %v288_v28  ;;  %v248_v43 = vadd.f32 %v246_v36, %v244_v37  ;;  %v271_v52 = vstv %s885_s20  ;;  %p641_p4 = scmp.ne.s32.totalorder %s639_s15, %s640_s18  ;;  %p646_p8 = scmp.lt.s32.totalorder %s644_s7, %s640_s18 }
  0x3c   : > { %v266_v44 = vadd.f32 %v265_v41, %v262_v39  ;;  %v249_v46 = vmul.f32 %v247_v40, %v222_v15  ;;  %v267_v48 = vadd.f32 %v265_v41, %v263_v42 }
  0x3d   : > { %v293_v34 = vadd.f32 1e-07, %v291_v29  ;;  %v294_v38 = vadd.f32 1e-07, %v292_v30  ;;  %v250_v51 = vmul.f32 %v248_v43, %v223_v19  ;;  %p642_p5 = pnand %p641_p4, %p792_p9  ;;  %p647_p10 = por %p646_p8, %p645_p7 }
  0x3e   : > { %v268_v58 = vmul.f32 %v266_v44, %v222_v15  ;;  %v269_v61 = vmul.f32 %v267_v48, %v223_v19  ;;  %v253_v63 = vadd.f32 %v252_v47, %v249_v46 }
  0x3f   : > { %575 = vrcp.f32 %v293_v34  ;;  %vm300_vm0 = vweird.f32 %v293_v34  ;;  %v304_v53 = vand.u32 2147483647, %v293_v34  ;;  %v306_v54 = vand.u32 2147483648, %v293_v34  ;;  %p643_p6 = pneg %p642_p5 }
  0x40   : > { %577 = vrcp.f32 %v294_v38  ;;  %vm315_vm1 = vweird.f32 %v294_v38  ;;  %v321_v57 = vand.u32 2147483648, %v294_v38  ;;  %v319_v60 = vand.u32 2147483647, %v294_v38 }
  0x41   : > { %v307_v0 = vor.u32 1.1754944e-38, %v306_v54  ;;  %vm305_vm5 = vcmp.eq.f32.partialorder %v304_v53, 8.507059e+37  ;;  %v272_v4 = vadd.f32 %v271_v52, %v268_v58  ;;  %v254_v5 = vadd.f32 %v252_v47, %v250_v51  ;;  %p648_p13 = pnand %p647_p10, %p643_p6 }
  0x42   : > { %v322_v3 = vor.u32 1.1754944e-38, %v321_v57  ;;  %vm320_vm7 = vcmp.eq.f32.partialorder %v319_v60, 8.507059e+37  ;;  %v273_v7 = vadd.f32 %v271_v52, %v269_v61 }
  0x45   : > { %v576_v45 = vpop.eup %575 }
  0x46   : > { %v578_v49 = vpop.eup %577  ;;  %v296_v50 = vmul.f32 %v576_v45, %v293_v34  ;;  %vm301_vm2 = vweird.f32 %v576_v45 }
  0x47   : > { %v311_v55 = vmul.f32 %v578_v49, %v294_v38  ;;  %vm316_vm3 = vweird.f32 %v578_v49  ;;  %vm302_vm4 = vmor %vm300_vm0, %vm301_vm2 }
  0x48   : > { %v297_v56 = vsub.f32 1.0, %v296_v50  ;;  %vm317_vm6 = vmor %vm315_vm1, %vm316_vm3 }
  0x49   : > { %v312_v59 = vsub.f32 1.0, %v311_v55 }
  0x4a   : > { %v298_v62 = vmul.f32 %v576_v45, %v297_v56 }
  0x4b   : > { %v313_v1 = vmul.f32 %v578_v49, %v312_v59 }
  0x4c   : > { %v299_v2 = vadd.f32 %v576_v45, %v298_v62 }
  0x4d   : > { %v314_v6 = vadd.f32 %v578_v49, %v313_v1 }
  0x4e   : > { %v303_v8 = vsel %vm302_vm4, %v576_v45, %v299_v2 }
  0x4f   : > { %v308_v9 = vsel %vm305_vm5, %v307_v0, %v303_v8  ;;  %v318_v10 = vsel %vm317_vm6, %v578_v49, %v314_v6 }
  0x50   : > { %v325_v11 = vmul.f32 %v308_v9, %v253_v63  ;;  %v323_v12 = vsel %vm320_vm7, %v322_v3, %v318_v10  ;;  %v332_v13 = vmul.f32 %v308_v9, %v272_v4 }
  0x51   : > { %v326_v14 = vmul.f32 %v323_v12, %v254_v5  ;;  %v333_v15 = vmul.f32 %v323_v12, %v273_v7 }
  0x52   : > { %v481_v16 = vadd.f32 -1.0, %v325_v11  ;;  %v483_v17 = vadd.f32 -1.0, %v332_v13 }
  0x53   : > { %v482_v18 = vadd.f32 -1.0, %v326_v14  ;;  %v484_v19 = vadd.f32 -1.0, %v333_v15 }
  0x54   : > { %330 = vst.msk [vmem:[%s219_s5] sm:$0xff] %vm329_vm8, %v481_v16 }
  0x55   : > { %331 = vst.msk [vmem:[%s219_s5 + $0x8] sm:$0xff] %vm329_vm8, %v482_v18 }
  0x56   : > { %485 = vst.msk [vmem:[%s219_s5 + $0x10] sm:$0xff] %vm329_vm8, %v483_v17 }
  0x57   : > { %486 = vst.msk [vmem:[%s219_s5 + $0x18] sm:$0xff] %vm329_vm8, %v484_v19 }
  0x58   : > { %651 = shalt.err (!%p648_p13)
}
  0x59   : > { %s725_s30 = smov 8  }
  0x5a   : > { %498 = dma.vmem_to_hbm [thread:$0]  (%p792_p9), %s355_s25, 512, %s357_s12, %s340_s3, %s719_s4, %s719_s4, %s725_s30  }
  0x5b PF: > { %s371_s20 = sand.u32 1, %s690_s9   ;;  %p508_p0 = pnand %p470_p12, %p799_p11 }
  0x5c   : > { %s372_s6 = scalar_lea.sflag [#allocation4], %s371_s20 }
  0x5d   : > { %p509_p1 = pneg %p508_p0 }
  0x5f   : > { %685 = dma.done.wait (%p509_p1), %s372_s6, 512  }
  0x60   : > { %687 = vsyncadd (%p509_p1), %s372_s6, 4294966784  ;;  %s21_s14 = sadd.s32 1, %s710_s14   ;;  %s940_s9 = smov %s694_s10 }
  0x61   : > { %p18_p2 = scmp.ge.s32.totalorder %s21_s14, 4   ;;  %s941_s10 = smov %s698_s11 }
  0x62   : > { %s942_s11 = smov %s797_s23  ;;  %s943_s12 = smov %s706_s13 }
  0x63   : > { %s944_s13 = smov %s946_s17  ;;  %20 = sbr.rel (!%p18_p2) target bundleno = 8 (0x8), region = 87 }
  0x68   :  { %378 = vsyncpa [#allocation3], 1 }
  0x69   :  { %380 = vsyncpa [#allocation3 + $0x1], 1 }
  0x6a   :  { %381 = vsyncpa [#allocation4], 1 }
  0x6b   :  { %383 = vsyncpa [#allocation4 + $0x1], 1 }
  0x6c   :  { %384 = vsyncpa [#allocation5], 1 }
  0x6d   :  { %386 = vsyncpa [#allocation5 + $0x1], 1 }

</bundles_post_ra>
